<compile_context>
chip_gen: v7x
topology: tpu7x:2x2x1
jax: 0.10.0
libtpu: 0.0.40
codegen_flags: <defaults>
</compile_context>

<pallas_src>
from functools import partial

import jax
import jax.numpy as jnp
from jax.experimental import pallas as pl
from jax.experimental.pallas import tpu as pltpu


# ------------------------------ fused kernel -------------------------------

def _bidirect_triplet_kernel(g0_ref, g1_ref, a0_ref, a1_ref, oh_ref, noise_ref,
                             o_ref, *, alpha, margin):
    f32 = jnp.float32
    B = g0_ref.shape[0]
    inv_b = 1.0 / B

    def l2_normalize(x):                       # F.normalize(x, dim=1)
        n = jnp.sqrt(jnp.sum(x * x, axis=1, keepdims=True))
        return x / jnp.maximum(n, 1e-12)

    g0 = l2_normalize(g0_ref[...])
    g1 = l2_normalize(g1_ref[...])
    a0 = l2_normalize(a0_ref[...])
    a1 = l2_normalize(a1_ref[...])

    # score = g0 @ a0.T + alpha * g1 @ a1.T   (contract last dims on the MXU)
    dn = (((1,), (1,)), ((), ()))
    score = (jax.lax.dot_general(g0, a0, dn, preferred_element_type=f32)
             + alpha * jax.lax.dot_general(g1, a1, dn, preferred_element_type=f32))

    row_id = jax.lax.broadcasted_iota(jnp.int32, (B, B), 0)
    col_id = jax.lax.broadcasted_iota(jnp.int32, (B, B), 1)
    diag_mask = row_id == col_id
    eye = diag_mask.astype(f32)

    true_row = jnp.sum(score * eye, axis=1, keepdims=True)   # (B, 1) diagonal
    true_col = jnp.sum(score * eye, axis=0, keepdims=True)   # (1, B) diagonal

    u1 = noise_ref[0]                                        # (B, B) uniform [0,1)
    u2 = noise_ref[1]

    # ---- semi-hard negative mining (idxSemiHardRow) ------------------------
    # TODO(synk): PyTorch uses Python random.sample to pick uniformly among the
    # semi-hard set; we draw the same uniform choice via jax.random noise, so
    # the distribution matches but the exact RNG stream differs.
    def neg_from_rows(mat, true_c, u):
        reduced = jnp.where(diag_mask, 0.0, mat)             # mat - diag(true)
        row_max = jnp.max(reduced, axis=1, keepdims=True)
        idx_hard = jnp.min(jnp.where(reduced == row_max, col_id, B),
                           axis=1, keepdims=True)            # first-occurrence argmax
        scaled = mat - true_c
        valid = jnp.logical_and(scaled < 0.0, scaled > -margin)
        pr = jnp.where(valid, u, -1.0)
        pr_max = jnp.max(pr, axis=1, keepdims=True)
        idx_semi = jnp.min(jnp.where(pr == pr_max, col_id, B), axis=1, keepdims=True)
        idx_neg = jnp.where(pr_max >= 0.0, idx_semi, idx_hard)       # (B, 1)
        onehot = (col_id == idx_neg).astype(f32)
        return jnp.sum(mat * onehot, axis=1, keepdims=True)          # mat[i, idx[i]]

    def neg_from_cols(mat, true_r, u):        # == neg_from_rows(mat.T, ...) w/o transpose
        reduced = jnp.where(diag_mask, 0.0, mat)
        col_max = jnp.max(reduced, axis=0, keepdims=True)
        idx_hard = jnp.min(jnp.where(reduced == col_max, row_id, B),
                           axis=0, keepdims=True)
        scaled = mat - true_r
        valid = jnp.logical_and(scaled < 0.0, scaled > -margin)
        pr = jnp.where(valid, u, -1.0)
        pr_max = jnp.max(pr, axis=0, keepdims=True)
        idx_semi = jnp.min(jnp.where(pr == pr_max, row_id, B), axis=0, keepdims=True)
        idx_neg = jnp.where(pr_max >= 0.0, idx_semi, idx_hard)       # (1, B)
        onehot = (row_id == idx_neg).astype(f32)
        return jnp.sum(mat * onehot, axis=0, keepdims=True)          # mat[idx[i], i]

    neg_1 = neg_from_rows(score, true_row, u1)
    neg_2 = neg_from_cols(score, true_col, u2)

    loss_1 = jnp.maximum(margin - true_row + neg_1, 0.0)             # (B, 1)
    loss_2 = jnp.maximum(margin - true_col + neg_2, 0.0)             # (1, B)
    loss_triplet = (jnp.sum(loss_1, axis=0, keepdims=True)
                    + jnp.sum(loss_2, axis=1, keepdims=True)) * inv_b  # (1, 1)

    # ---- symmetric cross-entropy with targets = arange(B) -------------------
    max_r = jnp.max(score, axis=1, keepdims=True)
    lse_r = jnp.log(jnp.sum(jnp.exp(score - max_r), axis=1, keepdims=True)) + max_r
    max_c = jnp.max(score, axis=0, keepdims=True)
    lse_c = jnp.log(jnp.sum(jnp.exp(score - max_c), axis=0, keepdims=True)) + max_c
    ce_row = jnp.sum(lse_r - true_row, axis=0, keepdims=True) * inv_b
    ce_col = jnp.sum(lse_c - true_col, axis=1, keepdims=True) * inv_b
    loss_cross = 0.5 * (ce_row + ce_col)                             # (1, 1)

    loss = loss_triplet + loss_cross

    # ---- matching probabilities ---------------------------------------------
    sm_col = jnp.exp(score - max_c)
    sm_col = sm_col / jnp.sum(sm_col, axis=0, keepdims=True)         # softmax(dim=0)
    sm_row = jnp.exp(score - max_r)
    sm_row = sm_row / jnp.sum(sm_row, axis=1, keepdims=True)         # softmax(dim=1)

    diag_c = jnp.sum(sm_col * eye, axis=0, keepdims=True)            # (1, B)
    diag_r = jnp.sum(sm_row * eye, axis=1, keepdims=True)            # (B, 1)
    cell_match = 0.5 * (jnp.sum(diag_c, axis=1, keepdims=True)
                        + jnp.sum(diag_r, axis=0, keepdims=True)) * inv_b   # (1, 1)

    # per-cell-type mass: diag(onehot.T @ sm @ onehot) / count, mean over present types
    oh = oh_ref[...]                                                 # (B, T_pad)
    count = jnp.sum(oh, axis=0, keepdims=True)                       # (1, T_pad)
    present = (count > 0.0).astype(f32)
    pair_c = jnp.sum(jnp.dot(sm_col, oh, preferred_element_type=f32) * oh,
                     axis=0, keepdims=True)
    pair_r = jnp.sum(jnp.dot(sm_row, oh, preferred_element_type=f32) * oh,
                     axis=0, keepdims=True)
    safe_cnt = jnp.maximum(count, 1.0)
    prob_c = jnp.where(count > 0.0, pair_c / safe_cnt, 0.0)
    prob_r = jnp.where(count > 0.0, pair_r / safe_cnt, 0.0)
    n_present = jnp.sum(present, axis=1, keepdims=True)              # (1, 1)
    ct_match = 0.5 * (jnp.sum(prob_c, axis=1, keepdims=True)
                      + jnp.sum(prob_r, axis=1, keepdims=True)) / n_present  # (1, 1)

    # ---- lane-dense packed result (single (1, 128) store) -------------------
    lane = jax.lax.broadcasted_iota(jnp.int32, (1, 128), 1)
    o_ref[...] = (jnp.where(lane == 0, loss, 0.0)
                  + jnp.where(lane == 1, loss_triplet, 0.0)
                  + jnp.where(lane == 2, loss_cross, 0.0)
                  + jnp.where(lane == 3, ct_match, 0.0)
                  + jnp.where(lane == 4, cell_match, 0.0))


# --------------------------------- wrapper ----------------------------------

def bidirect_triplet_loss(gex_out_0, gex_out_1, atac_out_0, atac_out_1,
                          cell_type, key, *, alpha, margin, num_types):
    """Equivalent of bidirectTripletLoss(alpha, margin).forward(...)."""
    B = gex_out_0.shape[0]

    # Uniform noise driving the semi-hard-negative random choice (one draw for
    # the row pass, one for the column pass).
    noise = jax.random.uniform(key, (2, B, B), jnp.float32)

    # Lane-padded one-hot cell-type matrix (padded types have count 0 and are
    # ignored inside the kernel).
    t_pad = max(128, ((num_types + 127) // 128) * 128)
    type_onehot = (cell_type[:, None]
                   == jnp.arange(t_pad, dtype=cell_type.dtype)[None, :]
                   ).astype(jnp.float32)                             # (B, t_pad)

    kernel = partial(_bidirect_triplet_kernel,
                     alpha=float(alpha), margin=float(margin))
    vmem = pl.BlockSpec(memory_space=pltpu.MemorySpace.VMEM)

    packed = pl.pallas_call(
        kernel,
        out_shape=jax.ShapeDtypeStruct((1, 128), jnp.float32),
        in_specs=[vmem, vmem, vmem, vmem, vmem, vmem],
        out_specs=vmem,
    )(gex_out_0, gex_out_1, atac_out_0, atac_out_1, type_onehot, noise)

    loss = packed[0, 0]
    loss_triplet = packed[0, 1]
    loss_cross = packed[0, 2]
    ct_match_prob = packed[0, 3]
    cell_match_prob = packed[0, 4]
    return loss, loss_triplet, loss_cross, ct_match_prob, cell_match_prob


# ----------------------------------- main ------------------------------------

if __name__ == "__main__":
    B, E = 8, 32            # batch_size, embedding_size
    NUM_TYPES = 3
    ALPHA, MARGIN = 0.5, 0.2

    key = jax.random.PRNGKey(0)
    k0, k1, k2, k3, k4, k_sample = jax.random.split(key, 6)
    gex_out_0 = jax.random.normal(k0, (B, E), jnp.float32)
    gex_out_1 = jax.random.normal(k1, (B, E), jnp.float32)
    atac_out_0 = jax.random.normal(k2, (B, E), jnp.float32)
    atac_out_1 = jax.random.normal(k3, (B, E), jnp.float32)
    cell_type = jax.random.randint(k4, (B,), 0, NUM_TYPES, jnp.int32)

    fwd = jax.jit(partial(bidirect_triplet_loss,
                          alpha=ALPHA, margin=MARGIN, num_types=NUM_TYPES))
    outs = fwd(gex_out_0, gex_out_1, atac_out_0, atac_out_1, cell_type, k_sample)
    outs = jax.block_until_ready(outs)
    loss, loss_triplet, loss_cross, ct_match_prob, cell_match_prob = outs

    assert all(o.shape == () for o in outs)
    assert all(bool(jnp.isfinite(o)) for o in outs)
    assert abs(float(loss) - (float(loss_triplet) + float(loss_cross))) < 1e-5
    assert -1e-6 <= float(cell_match_prob) <= 1.0 + 1e-6
    assert -1e-6 <= float(ct_match_prob) <= 1.0 + 1e-6
    print("KERNEL_OK")
</pallas_src>

<mosaic_0001>
module attributes {stable_mosaic.version = 11 : i64} {
  func.func @_bidirect_triplet_kernel(%arg0: memref<8x32xf32, #tpu.memory_space<vmem>>, %arg1: memref<8x32xf32, #tpu.memory_space<vmem>>, %arg2: memref<8x32xf32, #tpu.memory_space<vmem>>, %arg3: memref<8x32xf32, #tpu.memory_space<vmem>>, %arg4: memref<8x128xf32, #tpu.memory_space<vmem>>, %arg5: memref<2x8x8xf32, #tpu.memory_space<vmem>>, %arg6: memref<1x128xf32, #tpu.memory_space<vmem>>) attributes {dimension_semantics = [], scalar_prefetch = 0 : i64, scratch_operands = 0 : i64, tpu.core_type = #tpu.core_type<tc>} {
    %c0 = arith.constant 0 : index
    %c0_0 = arith.constant 0 : index
    %0 = vector.load %arg0[%c0, %c0_0] : memref<8x32xf32, #tpu.memory_space<vmem>>, vector<8x32xf32>
    %1 = arith.mulf %0, %0 : vector<8x32xf32>
    %cst = arith.constant dense<0.000000e+00> : vector<8xf32>
    %2 = vector.multi_reduction <add>, %1, %cst [1] : vector<8x32xf32> to vector<8xf32>
    %3 = vector.shape_cast %2 : vector<8xf32> to vector<8x1xf32>
    %4 = math.sqrt %3 : vector<8x1xf32>
    %cst_1 = arith.constant 9.99999996E-13 : f32
    %5 = vector.broadcast %cst_1 : f32 to vector<8x1xf32>
    %6 = arith.maximumf %4, %5 : vector<8x1xf32>
    %7 = vector.broadcast %6 : vector<8x1xf32> to vector<8x32xf32>
    %8 = arith.divf %0, %7 : vector<8x32xf32>
    %c0_2 = arith.constant 0 : index
    %c0_3 = arith.constant 0 : index
    %9 = vector.load %arg1[%c0_2, %c0_3] : memref<8x32xf32, #tpu.memory_space<vmem>>, vector<8x32xf32>
    %10 = arith.mulf %9, %9 : vector<8x32xf32>
    %cst_4 = arith.constant dense<0.000000e+00> : vector<8xf32>
    %11 = vector.multi_reduction <add>, %10, %cst_4 [1] : vector<8x32xf32> to vector<8xf32>
    %12 = vector.shape_cast %11 : vector<8xf32> to vector<8x1xf32>
    %13 = math.sqrt %12 : vector<8x1xf32>
    %cst_5 = arith.constant 9.99999996E-13 : f32
    %14 = vector.broadcast %cst_5 : f32 to vector<8x1xf32>
    %15 = arith.maximumf %13, %14 : vector<8x1xf32>
    %16 = vector.broadcast %15 : vector<8x1xf32> to vector<8x32xf32>
    %17 = arith.divf %9, %16 : vector<8x32xf32>
    %c0_6 = arith.constant 0 : index
    %c0_7 = arith.constant 0 : index
    %18 = vector.load %arg2[%c0_6, %c0_7] : memref<8x32xf32, #tpu.memory_space<vmem>>, vector<8x32xf32>
    %19 = arith.mulf %18, %18 : vector<8x32xf32>
    %cst_8 = arith.constant dense<0.000000e+00> : vector<8xf32>
    %20 = vector.multi_reduction <add>, %19, %cst_8 [1] : vector<8x32xf32> to vector<8xf32>
    %21 = vector.shape_cast %20 : vector<8xf32> to vector<8x1xf32>
    %22 = math.sqrt %21 : vector<8x1xf32>
    %cst_9 = arith.constant 9.99999996E-13 : f32
    %23 = vector.broadcast %cst_9 : f32 to vector<8x1xf32>
    %24 = arith.maximumf %22, %23 : vector<8x1xf32>
    %25 = vector.broadcast %24 : vector<8x1xf32> to vector<8x32xf32>
    %26 = arith.divf %18, %25 : vector<8x32xf32>
    %c0_10 = arith.constant 0 : index
    %c0_11 = arith.constant 0 : index
    %27 = vector.load %arg3[%c0_10, %c0_11] : memref<8x32xf32, #tpu.memory_space<vmem>>, vector<8x32xf32>
    %28 = arith.mulf %27, %27 : vector<8x32xf32>
    %cst_12 = arith.constant dense<0.000000e+00> : vector<8xf32>
    %29 = vector.multi_reduction <add>, %28, %cst_12 [1] : vector<8x32xf32> to vector<8xf32>
    %30 = vector.shape_cast %29 : vector<8xf32> to vector<8x1xf32>
    %31 = math.sqrt %30 : vector<8x1xf32>
    %cst_13 = arith.constant 9.99999996E-13 : f32
    %32 = vector.broadcast %cst_13 : f32 to vector<8x1xf32>
    %33 = arith.maximumf %31, %32 : vector<8x1xf32>
    %34 = vector.broadcast %33 : vector<8x1xf32> to vector<8x32xf32>
    %35 = arith.divf %27, %34 : vector<8x32xf32>
    %cst_14 = arith.constant dense<0.000000e+00> : vector<8x8xf32>
    %36 = tpu.matmul %8, %26, %cst_14 {dimension_numbers = #tpu.dot_dimension_numbers<[1], [1], [0], [0], [0, 0, 1, 0], [], []>} : vector<8x32xf32>, vector<8x32xf32>, vector<8x8xf32> -> vector<8x8xf32>
    %cst_15 = arith.constant dense<0.000000e+00> : vector<8x8xf32>
    %37 = tpu.matmul %17, %35, %cst_15 {dimension_numbers = #tpu.dot_dimension_numbers<[1], [1], [0], [0], [0, 0, 1, 0], [], []>} : vector<8x32xf32>, vector<8x32xf32>, vector<8x8xf32> -> vector<8x8xf32>
    %cst_16 = arith.constant 5.000000e-01 : f32
    %38 = vector.broadcast %cst_16 : f32 to vector<8x8xf32>
    %39 = arith.mulf %38, %37 : vector<8x8xf32>
    %40 = arith.addf %36, %39 : vector<8x8xf32>
    %41 = tpu.iota {dimensions = array<i32: 0>} : vector<8x8xi32>
    %42 = tpu.iota {dimensions = array<i32: 1>} : vector<8x8xi32>
    %43 = arith.cmpi eq, %41, %42 : vector<8x8xi32>
    %44 = arith.extui %43 : vector<8x8xi1> to vector<8x8xi32>
    %45 = arith.sitofp %44 : vector<8x8xi32> to vector<8x8xf32>
    %46 = arith.mulf %40, %45 : vector<8x8xf32>
    %cst_17 = arith.constant dense<0.000000e+00> : vector<8xf32>
    %47 = vector.multi_reduction <add>, %46, %cst_17 [1] : vector<8x8xf32> to vector<8xf32>
    %48 = vector.shape_cast %47 : vector<8xf32> to vector<8x1xf32>
    %49 = arith.mulf %40, %45 : vector<8x8xf32>
    %cst_18 = arith.constant dense<0.000000e+00> : vector<8xf32>
    %50 = vector.multi_reduction <add>, %49, %cst_18 [0] : vector<8x8xf32> to vector<8xf32>
    %51 = vector.shape_cast %50 : vector<8xf32> to vector<1x8xf32>
    %c0_19 = arith.constant 0 : index
    %c0_20 = arith.constant 0 : index
    %c0_21 = arith.constant 0 : index
    %52 = vector.load %arg5[%c0_19, %c0_20, %c0_21] : memref<2x8x8xf32, #tpu.memory_space<vmem>>, vector<1x8x8xf32>
    %53 = vector.shape_cast %52 : vector<1x8x8xf32> to vector<8x8xf32>
    %c1 = arith.constant 1 : index
    %c0_22 = arith.constant 0 : index
    %c0_23 = arith.constant 0 : index
    %54 = vector.load %arg5[%c1, %c0_22, %c0_23] : memref<2x8x8xf32, #tpu.memory_space<vmem>>, vector<1x8x8xf32>
    %55 = vector.shape_cast %54 : vector<1x8x8xf32> to vector<8x8xf32>
    %cst_24 = arith.constant 0.000000e+00 : f32
    %56 = vector.broadcast %cst_24 : f32 to vector<8x8xf32>
    %57 = arith.select %43, %56, %40 : vector<8x8xi1>, vector<8x8xf32>
    %cst_25 = arith.constant dense<0xFF800000> : vector<8xf32>
    %58 = vector.multi_reduction <maximumf>, %57, %cst_25 [1] : vector<8x8xf32> to vector<8xf32>
    %59 = vector.shape_cast %58 : vector<8xf32> to vector<8x1xf32>
    %60 = vector.broadcast %59 : vector<8x1xf32> to vector<8x8xf32>
    %61 = arith.cmpf oeq, %57, %60 : vector<8x8xf32>
    %c8_i32 = arith.constant 8 : i32
    %62 = vector.broadcast %c8_i32 : i32 to vector<8x8xi32>
    %63 = arith.select %61, %42, %62 : vector<8x8xi1>, vector<8x8xi32>
    %cst_26 = arith.constant dense<2147483647> : vector<8xi32>
    %64 = vector.multi_reduction <minsi>, %63, %cst_26 [1] : vector<8x8xi32> to vector<8xi32>
    %65 = vector.shape_cast %64 : vector<8xi32> to vector<8x1xi32>
    %66 = vector.broadcast %48 : vector<8x1xf32> to vector<8x8xf32>
    %67 = arith.subf %40, %66 : vector<8x8xf32>
    %cst_27 = arith.constant 0.000000e+00 : f32
    %68 = vector.broadcast %cst_27 : f32 to vector<8x8xf32>
    %69 = arith.cmpf olt, %67, %68 : vector<8x8xf32>
    %cst_28 = arith.constant -2.000000e-01 : f32
    %70 = vector.broadcast %cst_28 : f32 to vector<8x8xf32>
    %71 = arith.cmpf ogt, %67, %70 : vector<8x8xf32>
    %72 = arith.andi %69, %71 : vector<8x8xi1>
    %cst_29 = arith.constant -1.000000e+00 : f32
    %73 = vector.broadcast %cst_29 : f32 to vector<8x8xf32>
    %74 = arith.select %72, %53, %73 : vector<8x8xi1>, vector<8x8xf32>
    %cst_30 = arith.constant dense<0xFF800000> : vector<8xf32>
    %75 = vector.multi_reduction <maximumf>, %74, %cst_30 [1] : vector<8x8xf32> to vector<8xf32>
    %76 = vector.shape_cast %75 : vector<8xf32> to vector<8x1xf32>
    %77 = vector.broadcast %76 : vector<8x1xf32> to vector<8x8xf32>
    %78 = arith.cmpf oeq, %74, %77 : vector<8x8xf32>
    %c8_i32_31 = arith.constant 8 : i32
    %79 = vector.broadcast %c8_i32_31 : i32 to vector<8x8xi32>
    %80 = arith.select %78, %42, %79 : vector<8x8xi1>, vector<8x8xi32>
    %cst_32 = arith.constant dense<2147483647> : vector<8xi32>
    %81 = vector.multi_reduction <minsi>, %80, %cst_32 [1] : vector<8x8xi32> to vector<8xi32>
    %82 = vector.shape_cast %81 : vector<8xi32> to vector<8x1xi32>
    %cst_33 = arith.constant 0.000000e+00 : f32
    %83 = vector.broadcast %cst_33 : f32 to vector<8x1xf32>
    %84 = arith.cmpf oge, %76, %83 : vector<8x1xf32>
    %85 = arith.select %84, %82, %65 : vector<8x1xi1>, vector<8x1xi32>
    %86 = vector.broadcast %85 : vector<8x1xi32> to vector<8x8xi32>
    %87 = arith.cmpi eq, %42, %86 : vector<8x8xi32>
    %88 = arith.extui %87 : vector<8x8xi1> to vector<8x8xi32>
    %89 = arith.sitofp %88 : vector<8x8xi32> to vector<8x8xf32>
    %90 = arith.mulf %40, %89 : vector<8x8xf32>
    %cst_34 = arith.constant dense<0.000000e+00> : vector<8xf32>
    %91 = vector.multi_reduction <add>, %90, %cst_34 [1] : vector<8x8xf32> to vector<8xf32>
    %92 = vector.shape_cast %91 : vector<8xf32> to vector<8x1xf32>
    %cst_35 = arith.constant 0.000000e+00 : f32
    %93 = vector.broadcast %cst_35 : f32 to vector<8x8xf32>
    %94 = arith.select %43, %93, %40 : vector<8x8xi1>, vector<8x8xf32>
    %cst_36 = arith.constant dense<0xFF800000> : vector<8xf32>
    %95 = vector.multi_reduction <maximumf>, %94, %cst_36 [0] : vector<8x8xf32> to vector<8xf32>
    %96 = vector.shape_cast %95 : vector<8xf32> to vector<1x8xf32>
    %97 = vector.broadcast %96 : vector<1x8xf32> to vector<8x8xf32>
    %98 = arith.cmpf oeq, %94, %97 : vector<8x8xf32>
    %c8_i32_37 = arith.constant 8 : i32
    %99 = vector.broadcast %c8_i32_37 : i32 to vector<8x8xi32>
    %100 = arith.select %98, %41, %99 : vector<8x8xi1>, vector<8x8xi32>
    %cst_38 = arith.constant dense<2147483647> : vector<8xi32>
    %101 = vector.multi_reduction <minsi>, %100, %cst_38 [0] : vector<8x8xi32> to vector<8xi32>
    %102 = vector.shape_cast %101 : vector<8xi32> to vector<1x8xi32>
    %103 = vector.broadcast %51 : vector<1x8xf32> to vector<8x8xf32>
    %104 = arith.subf %40, %103 : vector<8x8xf32>
    %cst_39 = arith.constant 0.000000e+00 : f32
    %105 = vector.broadcast %cst_39 : f32 to vector<8x8xf32>
    %106 = arith.cmpf olt, %104, %105 : vector<8x8xf32>
    %cst_40 = arith.constant -2.000000e-01 : f32
    %107 = vector.broadcast %cst_40 : f32 to vector<8x8xf32>
    %108 = arith.cmpf ogt, %104, %107 : vector<8x8xf32>
    %109 = arith.andi %106, %108 : vector<8x8xi1>
    %cst_41 = arith.constant -1.000000e+00 : f32
    %110 = vector.broadcast %cst_41 : f32 to vector<8x8xf32>
    %111 = arith.select %109, %55, %110 : vector<8x8xi1>, vector<8x8xf32>
    %cst_42 = arith.constant dense<0xFF800000> : vector<8xf32>
    %112 = vector.multi_reduction <maximumf>, %111, %cst_42 [0] : vector<8x8xf32> to vector<8xf32>
    %113 = vector.shape_cast %112 : vector<8xf32> to vector<1x8xf32>
    %114 = vector.broadcast %113 : vector<1x8xf32> to vector<8x8xf32>
    %115 = arith.cmpf oeq, %111, %114 : vector<8x8xf32>
    %c8_i32_43 = arith.constant 8 : i32
    %116 = vector.broadcast %c8_i32_43 : i32 to vector<8x8xi32>
    %117 = arith.select %115, %41, %116 : vector<8x8xi1>, vector<8x8xi32>
    %cst_44 = arith.constant dense<2147483647> : vector<8xi32>
    %118 = vector.multi_reduction <minsi>, %117, %cst_44 [0] : vector<8x8xi32> to vector<8xi32>
    %119 = vector.shape_cast %118 : vector<8xi32> to vector<1x8xi32>
    %cst_45 = arith.constant 0.000000e+00 : f32
    %120 = vector.broadcast %cst_45 : f32 to vector<1x8xf32>
    %121 = arith.cmpf oge, %113, %120 : vector<1x8xf32>
    %122 = arith.select %121, %119, %102 : vector<1x8xi1>, vector<1x8xi32>
    %123 = vector.broadcast %122 : vector<1x8xi32> to vector<8x8xi32>
    %124 = arith.cmpi eq, %41, %123 : vector<8x8xi32>
    %125 = arith.extui %124 : vector<8x8xi1> to vector<8x8xi32>
    %126 = arith.sitofp %125 : vector<8x8xi32> to vector<8x8xf32>
    %127 = arith.mulf %40, %126 : vector<8x8xf32>
    %cst_46 = arith.constant dense<0.000000e+00> : vector<8xf32>
    %128 = vector.multi_reduction <add>, %127, %cst_46 [0] : vector<8x8xf32> to vector<8xf32>
    %129 = vector.shape_cast %128 : vector<8xf32> to vector<1x8xf32>
    %cst_47 = arith.constant 2.000000e-01 : f32
    %130 = vector.broadcast %cst_47 : f32 to vector<8x1xf32>
    %131 = arith.subf %130, %48 : vector<8x1xf32>
    %132 = arith.addf %131, %92 : vector<8x1xf32>
    %cst_48 = arith.constant 0.000000e+00 : f32
    %133 = vector.broadcast %cst_48 : f32 to vector<8x1xf32>
    %134 = arith.maximumf %132, %133 : vector<8x1xf32>
    %cst_49 = arith.constant 2.000000e-01 : f32
    %135 = vector.broadcast %cst_49 : f32 to vector<1x8xf32>
    %136 = arith.subf %135, %51 : vector<1x8xf32>
    %137 = arith.addf %136, %129 : vector<1x8xf32>
    %cst_50 = arith.constant 0.000000e+00 : f32
    %138 = vector.broadcast %cst_50 : f32 to vector<1x8xf32>
    %139 = arith.maximumf %137, %138 : vector<1x8xf32>
    %cst_51 = arith.constant dense<0.000000e+00> : vector<1xf32>
    %140 = vector.multi_reduction <add>, %134, %cst_51 [0] : vector<8x1xf32> to vector<1xf32>
    %141 = vector.shape_cast %140 : vector<1xf32> to vector<1x1xf32>
    %cst_52 = arith.constant dense<0.000000e+00> : vector<1xf32>
    %142 = vector.multi_reduction <add>, %139, %cst_52 [1] : vector<1x8xf32> to vector<1xf32>
    %143 = vector.shape_cast %142 : vector<1xf32> to vector<1x1xf32>
    %144 = arith.addf %141, %143 : vector<1x1xf32>
    %cst_53 = arith.constant 1.250000e-01 : f32
    %145 = vector.broadcast %cst_53 : f32 to vector<1x1xf32>
    %146 = arith.mulf %144, %145 : vector<1x1xf32>
    %cst_54 = arith.constant dense<0xFF800000> : vector<8xf32>
    %147 = vector.multi_reduction <maximumf>, %40, %cst_54 [1] : vector<8x8xf32> to vector<8xf32>
    %148 = vector.shape_cast %147 : vector<8xf32> to vector<8x1xf32>
    %149 = vector.broadcast %148 : vector<8x1xf32> to vector<8x8xf32>
    %150 = arith.subf %40, %149 : vector<8x8xf32>
    %151 = math.exp %150 : vector<8x8xf32>
    %cst_55 = arith.constant dense<0.000000e+00> : vector<8xf32>
    %152 = vector.multi_reduction <add>, %151, %cst_55 [1] : vector<8x8xf32> to vector<8xf32>
    %153 = vector.shape_cast %152 : vector<8xf32> to vector<8x1xf32>
    %154 = math.log %153 : vector<8x1xf32>
    %155 = arith.addf %154, %148 : vector<8x1xf32>
    %cst_56 = arith.constant dense<0xFF800000> : vector<8xf32>
    %156 = vector.multi_reduction <maximumf>, %40, %cst_56 [0] : vector<8x8xf32> to vector<8xf32>
    %157 = vector.shape_cast %156 : vector<8xf32> to vector<1x8xf32>
    %158 = vector.broadcast %157 : vector<1x8xf32> to vector<8x8xf32>
    %159 = arith.subf %40, %158 : vector<8x8xf32>
    %160 = math.exp %159 : vector<8x8xf32>
    %cst_57 = arith.constant dense<0.000000e+00> : vector<8xf32>
    %161 = vector.multi_reduction <add>, %160, %cst_57 [0] : vector<8x8xf32> to vector<8xf32>
    %162 = vector.shape_cast %161 : vector<8xf32> to vector<1x8xf32>
    %163 = math.log %162 : vector<1x8xf32>
    %164 = arith.addf %163, %157 : vector<1x8xf32>
    %165 = arith.subf %155, %48 : vector<8x1xf32>
    %cst_58 = arith.constant dense<0.000000e+00> : vector<1xf32>
    %166 = vector.multi_reduction <add>, %165, %cst_58 [0] : vector<8x1xf32> to vector<1xf32>
    %167 = vector.shape_cast %166 : vector<1xf32> to vector<1x1xf32>
    %cst_59 = arith.constant 1.250000e-01 : f32
    %168 = vector.broadcast %cst_59 : f32 to vector<1x1xf32>
    %169 = arith.mulf %167, %168 : vector<1x1xf32>
    %170 = arith.subf %164, %51 : vector<1x8xf32>
    %cst_60 = arith.constant dense<0.000000e+00> : vector<1xf32>
    %171 = vector.multi_reduction <add>, %170, %cst_60 [1] : vector<1x8xf32> to vector<1xf32>
    %172 = vector.shape_cast %171 : vector<1xf32> to vector<1x1xf32>
    %cst_61 = arith.constant 1.250000e-01 : f32
    %173 = vector.broadcast %cst_61 : f32 to vector<1x1xf32>
    %174 = arith.mulf %172, %173 : vector<1x1xf32>
    %175 = arith.addf %169, %174 : vector<1x1xf32>
    %cst_62 = arith.constant 5.000000e-01 : f32
    %176 = vector.broadcast %cst_62 : f32 to vector<1x1xf32>
    %177 = arith.mulf %176, %175 : vector<1x1xf32>
    %178 = arith.addf %146, %177 : vector<1x1xf32>
    %179 = vector.broadcast %157 : vector<1x8xf32> to vector<8x8xf32>
    %180 = arith.subf %40, %179 : vector<8x8xf32>
    %181 = math.exp %180 : vector<8x8xf32>
    %cst_63 = arith.constant dense<0.000000e+00> : vector<8xf32>
    %182 = vector.multi_reduction <add>, %181, %cst_63 [0] : vector<8x8xf32> to vector<8xf32>
    %183 = vector.shape_cast %182 : vector<8xf32> to vector<1x8xf32>
    %184 = vector.broadcast %183 : vector<1x8xf32> to vector<8x8xf32>
    %185 = arith.divf %181, %184 : vector<8x8xf32>
    %186 = vector.broadcast %148 : vector<8x1xf32> to vector<8x8xf32>
    %187 = arith.subf %40, %186 : vector<8x8xf32>
    %188 = math.exp %187 : vector<8x8xf32>
    %cst_64 = arith.constant dense<0.000000e+00> : vector<8xf32>
    %189 = vector.multi_reduction <add>, %188, %cst_64 [1] : vector<8x8xf32> to vector<8xf32>
    %190 = vector.shape_cast %189 : vector<8xf32> to vector<8x1xf32>
    %191 = vector.broadcast %190 : vector<8x1xf32> to vector<8x8xf32>
    %192 = arith.divf %188, %191 : vector<8x8xf32>
    %193 = arith.mulf %185, %45 : vector<8x8xf32>
    %cst_65 = arith.constant dense<0.000000e+00> : vector<8xf32>
    %194 = vector.multi_reduction <add>, %193, %cst_65 [0] : vector<8x8xf32> to vector<8xf32>
    %195 = vector.shape_cast %194 : vector<8xf32> to vector<1x8xf32>
    %196 = arith.mulf %192, %45 : vector<8x8xf32>
    %cst_66 = arith.constant dense<0.000000e+00> : vector<8xf32>
    %197 = vector.multi_reduction <add>, %196, %cst_66 [1] : vector<8x8xf32> to vector<8xf32>
    %198 = vector.shape_cast %197 : vector<8xf32> to vector<8x1xf32>
    %cst_67 = arith.constant dense<0.000000e+00> : vector<1xf32>
    %199 = vector.multi_reduction <add>, %195, %cst_67 [1] : vector<1x8xf32> to vector<1xf32>
    %200 = vector.shape_cast %199 : vector<1xf32> to vector<1x1xf32>
    %cst_68 = arith.constant dense<0.000000e+00> : vector<1xf32>
    %201 = vector.multi_reduction <add>, %198, %cst_68 [0] : vector<8x1xf32> to vector<1xf32>
    %202 = vector.shape_cast %201 : vector<1xf32> to vector<1x1xf32>
    %203 = arith.addf %200, %202 : vector<1x1xf32>
    %cst_69 = arith.constant 5.000000e-01 : f32
    %204 = vector.broadcast %cst_69 : f32 to vector<1x1xf32>
    %205 = arith.mulf %204, %203 : vector<1x1xf32>
    %cst_70 = arith.constant 1.250000e-01 : f32
    %206 = vector.broadcast %cst_70 : f32 to vector<1x1xf32>
    %207 = arith.mulf %205, %206 : vector<1x1xf32>
    %c0_71 = arith.constant 0 : index
    %c0_72 = arith.constant 0 : index
    %208 = vector.load %arg4[%c0_71, %c0_72] : memref<8x128xf32, #tpu.memory_space<vmem>>, vector<8x128xf32>
    %cst_73 = arith.constant dense<0.000000e+00> : vector<128xf32>
    %209 = vector.multi_reduction <add>, %208, %cst_73 [0] : vector<8x128xf32> to vector<128xf32>
    %210 = vector.shape_cast %209 : vector<128xf32> to vector<1x128xf32>
    %cst_74 = arith.constant 0.000000e+00 : f32
    %211 = vector.broadcast %cst_74 : f32 to vector<1x128xf32>
    %212 = arith.cmpf ogt, %210, %211 : vector<1x128xf32>
    %213 = arith.extui %212 : vector<1x128xi1> to vector<1x128xi32>
    %214 = arith.sitofp %213 : vector<1x128xi32> to vector<1x128xf32>
    %cst_75 = arith.constant dense<0.000000e+00> : vector<8x128xf32>
    %215 = tpu.matmul %185, %208, %cst_75 {dimension_numbers = #tpu.dot_dimension_numbers<[1], [0], [0], [1], [0, 0, 1, 1], [], []>} : vector<8x8xf32>, vector<8x128xf32>, vector<8x128xf32> -> vector<8x128xf32>
    %216 = arith.mulf %215, %208 : vector<8x128xf32>
    %cst_76 = arith.constant dense<0.000000e+00> : vector<128xf32>
    %217 = vector.multi_reduction <add>, %216, %cst_76 [0] : vector<8x128xf32> to vector<128xf32>
    %218 = vector.shape_cast %217 : vector<128xf32> to vector<1x128xf32>
    %cst_77 = arith.constant dense<0.000000e+00> : vector<8x128xf32>
    %219 = tpu.matmul %192, %208, %cst_77 {dimension_numbers = #tpu.dot_dimension_numbers<[1], [0], [0], [1], [0, 0, 1, 1], [], []>} : vector<8x8xf32>, vector<8x128xf32>, vector<8x128xf32> -> vector<8x128xf32>
    %220 = arith.mulf %219, %208 : vector<8x128xf32>
    %cst_78 = arith.constant dense<0.000000e+00> : vector<128xf32>
    %221 = vector.multi_reduction <add>, %220, %cst_78 [0] : vector<8x128xf32> to vector<128xf32>
    %222 = vector.shape_cast %221 : vector<128xf32> to vector<1x128xf32>
    %cst_79 = arith.constant 1.000000e+00 : f32
    %223 = vector.broadcast %cst_79 : f32 to vector<1x128xf32>
    %224 = arith.maximumf %210, %223 : vector<1x128xf32>
    %cst_80 = arith.constant 0.000000e+00 : f32
    %225 = vector.broadcast %cst_80 : f32 to vector<1x128xf32>
    %226 = arith.cmpf ogt, %210, %225 : vector<1x128xf32>
    %227 = arith.divf %218, %224 : vector<1x128xf32>
    %cst_81 = arith.constant 0.000000e+00 : f32
    %228 = vector.broadcast %cst_81 : f32 to vector<1x128xf32>
    %229 = arith.select %226, %227, %228 : vector<1x128xi1>, vector<1x128xf32>
    %cst_82 = arith.constant 0.000000e+00 : f32
    %230 = vector.broadcast %cst_82 : f32 to vector<1x128xf32>
    %231 = arith.cmpf ogt, %210, %230 : vector<1x128xf32>
    %232 = arith.divf %222, %224 : vector<1x128xf32>
    %cst_83 = arith.constant 0.000000e+00 : f32
    %233 = vector.broadcast %cst_83 : f32 to vector<1x128xf32>
    %234 = arith.select %231, %232, %233 : vector<1x128xi1>, vector<1x128xf32>
    %cst_84 = arith.constant dense<0.000000e+00> : vector<1xf32>
    %235 = vector.multi_reduction <add>, %214, %cst_84 [1] : vector<1x128xf32> to vector<1xf32>
    %236 = vector.shape_cast %235 : vector<1xf32> to vector<1x1xf32>
    %cst_85 = arith.constant dense<0.000000e+00> : vector<1xf32>
    %237 = vector.multi_reduction <add>, %229, %cst_85 [1] : vector<1x128xf32> to vector<1xf32>
    %238 = vector.shape_cast %237 : vector<1xf32> to vector<1x1xf32>
    %cst_86 = arith.constant dense<0.000000e+00> : vector<1xf32>
    %239 = vector.multi_reduction <add>, %234, %cst_86 [1] : vector<1x128xf32> to vector<1xf32>
    %240 = vector.shape_cast %239 : vector<1xf32> to vector<1x1xf32>
    %241 = arith.addf %238, %240 : vector<1x1xf32>
    %cst_87 = arith.constant 5.000000e-01 : f32
    %242 = vector.broadcast %cst_87 : f32 to vector<1x1xf32>
    %243 = arith.mulf %242, %241 : vector<1x1xf32>
    %244 = arith.divf %243, %236 : vector<1x1xf32>
    %245 = tpu.iota {dimensions = array<i32: 1>} : vector<1x128xi32>
    %c0_i32 = arith.constant 0 : i32
    %246 = vector.broadcast %c0_i32 : i32 to vector<1x128xi32>
    %247 = arith.cmpi eq, %245, %246 : vector<1x128xi32>
    %cst_88 = arith.constant 0.000000e+00 : f32
    %248 = vector.shape_cast %178 : vector<1x1xf32> to vector<1x1xf32>
    %249 = vector.broadcast %248 : vector<1x1xf32> to vector<1x128xf32>
    %250 = vector.broadcast %cst_88 : f32 to vector<1x128xf32>
    %251 = arith.select %247, %249, %250 : vector<1x128xi1>, vector<1x128xf32>
    %c1_i32 = arith.constant 1 : i32
    %252 = vector.broadcast %c1_i32 : i32 to vector<1x128xi32>
    %253 = arith.cmpi eq, %245, %252 : vector<1x128xi32>
    %cst_89 = arith.constant 0.000000e+00 : f32
    %254 = vector.shape_cast %146 : vector<1x1xf32> to vector<1x1xf32>
    %255 = vector.broadcast %254 : vector<1x1xf32> to vector<1x128xf32>
    %256 = vector.broadcast %cst_89 : f32 to vector<1x128xf32>
    %257 = arith.select %253, %255, %256 : vector<1x128xi1>, vector<1x128xf32>
    %258 = arith.addf %251, %257 : vector<1x128xf32>
    %c2_i32 = arith.constant 2 : i32
    %259 = vector.broadcast %c2_i32 : i32 to vector<1x128xi32>
    %260 = arith.cmpi eq, %245, %259 : vector<1x128xi32>
    %cst_90 = arith.constant 0.000000e+00 : f32
    %261 = vector.shape_cast %177 : vector<1x1xf32> to vector<1x1xf32>
    %262 = vector.broadcast %261 : vector<1x1xf32> to vector<1x128xf32>
    %263 = vector.broadcast %cst_90 : f32 to vector<1x128xf32>
    %264 = arith.select %260, %262, %263 : vector<1x128xi1>, vector<1x128xf32>
    %265 = arith.addf %258, %264 : vector<1x128xf32>
    %c3_i32 = arith.constant 3 : i32
    %266 = vector.broadcast %c3_i32 : i32 to vector<1x128xi32>
    %267 = arith.cmpi eq, %245, %266 : vector<1x128xi32>
    %cst_91 = arith.constant 0.000000e+00 : f32
    %268 = vector.shape_cast %244 : vector<1x1xf32> to vector<1x1xf32>
    %269 = vector.broadcast %268 : vector<1x1xf32> to vector<1x128xf32>
    %270 = vector.broadcast %cst_91 : f32 to vector<1x128xf32>
    %271 = arith.select %267, %269, %270 : vector<1x128xi1>, vector<1x128xf32>
    %272 = arith.addf %265, %271 : vector<1x128xf32>
    %c4_i32 = arith.constant 4 : i32
    %273 = vector.broadcast %c4_i32 : i32 to vector<1x128xi32>
    %274 = arith.cmpi eq, %245, %273 : vector<1x128xi32>
    %cst_92 = arith.constant 0.000000e+00 : f32
    %275 = vector.shape_cast %207 : vector<1x1xf32> to vector<1x1xf32>
    %276 = vector.broadcast %275 : vector<1x1xf32> to vector<1x128xf32>
    %277 = vector.broadcast %cst_92 : f32 to vector<1x128xf32>
    %278 = arith.select %274, %276, %277 : vector<1x128xi1>, vector<1x128xf32>
    %279 = arith.addf %272, %278 : vector<1x128xf32>
    %c0_93 = arith.constant 0 : index
    %c0_94 = arith.constant 0 : index
    %280 = vector.load %arg6[%c0_93, %c0_94] : memref<1x128xf32, #tpu.memory_space<vmem>>, vector<1x128xf32>
    tpu.vector_store %arg6[%c0_93, %c0_94], %279 {strides = array<i32>} : memref<1x128xf32, #tpu.memory_space<vmem>>, vector<1x128xf32>,
    return
  }
}

</mosaic_0001>

<bundles_post_ra>
// kernel: bidirect_triplet_loss.1
= control target key start
LH: loop header
LB: loop body
LE: loop exit
PB: predicated region body
PF: predicated region fallthrough
CT: control target
= control target key end

     0   :  { %vm25_vm0 = vcmask 261120   ;;  %v738_v12 = vmov 0.0   ;;  %vm739_vm1 = vmmov 0   ;;  %v237_v50 = vlaneseq  ;;  %s962_s3 = inlined_call_operand.vmem [shape: f32[8,32], index: 3, kind: input, shape index: {}]   ;;  %s963_s1 = inlined_call_operand.vmem [shape: f32[8,32], index: 1, kind: input, shape index: {}]   ;;  %s964_s2 = inlined_call_operand.vmem [shape: f32[8,32], index: 2, kind: input, shape index: {}]   ;;  %s965_s0 = inlined_call_operand.vmem [shape: f32[8,32], index: 0, kind: input, shape index: {}]   ;;  %s966_s4 = inlined_call_operand.vmem [shape: f32[8,128], index: 4, kind: input, shape index: {}]   ;;  %s967_s5 = inlined_call_operand.vmem [shape: f32[2,8,8], index: 5, kind: input, shape index: {}]   ;;  %s968_s6 = inlined_call_operand.vmem [shape: f32[1,128], index: 6, kind: output, shape index: {}]  }
   0x1   :  { %v778_v0 = vld [vmem:[%s962_s3] sm:$0xff]  ;;  %684 = vmatprep.subr.mxu0 %v738_v12  ;;  %689 = vmatprep.subr.mxu1 %v738_v12  ;;  %vm245_vm11 = vcmask 64512  }
   0x2   :  { %v783_v1 = vld [vmem:[%s963_s1] sm:$0xff]  ;;  %v70_v3 = vmul.f32 %v778_v0, %v778_v0  ;;  %686 = vmatprep.mubr.msk.f32.mxu0 %vm739_vm1, %v738_v12  ;;  %691 = vmatprep.mubr.msk.f32.mxu1 %vm739_vm1, %v738_v12  ;;  %v834_v51 = vshrl.u32 %v237_v50, 7  ;;  %v836_v52 = vand.u32 127, %v237_v50 }
   0x3   :  { %v788_v2 = vld [vmem:[%s964_s2] sm:$0xff]  ;;  %v40_v4 = vmul.f32 %v783_v1, %v783_v1 }
   0x4   :  { %v55_v5 = vmul.f32 %v788_v2, %v788_v2  ;;  %v799_v6 = vld [vmem:[%s965_s0] sm:$0xff]  ;;  %v71_v8 = vsel %vm25_vm0, %v70_v3, 0.0  ;;  %vm241_vm10 = vcmp.eq.s32.totalorder %v834_v51, %v836_v52 }
   0x5   :  { %v24_v7 = vmul.f32 %v799_v6, %v799_v6  ;;  %v41_v9 = vsel %vm25_vm0, %v40_v4, 0.0  ;;  %72 = vadd.xlane.f32.xlu0 %v71_v8  ;;  %v830_v49 = vld [vmem:[%s966_s4] sm:$0xff]  ;;  %v841_v57 = vsel %vm241_vm10, 1.0, %v738_v12 }
   0x6   :  { %42 = vadd.xlane.f32.xlu1 %v41_v9  ;;  %v56_v10 = vsel %vm25_vm0, %v55_v5, 0.0 }
   0x7   :  { %v26_v11 = vsel %vm25_vm0, %v24_v7, 0.0 }
   0x9   :  { %57 = vadd.xlane.f32.xlu0 %v56_v10 }
   0xa   :  { %27 = vadd.xlane.f32.xlu1 %v26_v11 }
  0x92   :  { %v73_v13 = vpop.xlane.xlu0 %72 }
  0x93   :  { %v43_v14 = vpop.xlane.xlu1 %42  ;;  %706 = vrsqrt.f32 %v73_v13  ;;  %vm76_vm2 = vcmp.eq.f32.partialorder %v73_v13, inf  ;;  %v79_v20 = vand.u32 2147483648, %v73_v13  ;;  %vm78_vm3 = vcmp.eq.f32.partialorder %v73_v13, 0.0 }
  0x94   :  { %708 = vrsqrt.f32 %v43_v14  ;;  %vm46_vm4 = vcmp.eq.f32.partialorder %v43_v14, inf  ;;  %v49_v23 = vand.u32 2147483648, %v43_v14  ;;  %vm48_vm5 = vcmp.eq.f32.partialorder %v43_v14, 0.0 }
  0x96   :  { %v58_v15 = vpop.xlane.xlu0 %57 }
  0x97   :  { %v28_v16 = vpop.xlane.xlu1 %27  ;;  %710 = vrsqrt.f32 %v58_v15  ;;  %vm61_vm6 = vcmp.eq.f32.partialorder %v58_v15, inf  ;;  %vm63_vm7 = vcmp.eq.f32.partialorder %v58_v15, 0.0  ;;  %v64_v32 = vand.u32 2147483648, %v58_v15 }
  0x98   :  { %712 = vrsqrt.f32 %v28_v16  ;;  %vm31_vm8 = vcmp.eq.f32.partialorder %v28_v16, inf  ;;  %v34_v35 = vand.u32 2147483648, %v28_v16  ;;  %vm33_vm9 = vcmp.eq.f32.partialorder %v28_v16, 0.0 }
  0x9d   :  { %v707_v17 = vpop.eup %706 }
  0x9e   :  { %v709_v18 = vpop.eup %708  ;;  %v75_v19 = vmul.f32 %v707_v17, %v73_v13 }
  0x9f   :  { %v45_v21 = vmul.f32 %v709_v18, %v43_v14 }
  0xa0   :  { %v77_v22 = vsel %vm76_vm2, %v73_v13, %v75_v19 }
  0xa1   :  { %v711_v24 = vpop.eup %710  ;;  %v80_v25 = vsel %vm78_vm3, %v79_v20, %v77_v22  ;;  %v47_v26 = vsel %vm46_vm4, %v43_v14, %v45_v21 }
  0xa2   :  { %v713_v27 = vpop.eup %712  ;;  %v81_v28 = vmax.f32 %v80_v25, 1e-12  ;;  %v50_v29 = vsel %vm48_vm5, %v49_v23, %v47_v26  ;;  %v60_v30 = vmul.f32 %v711_v24, %v58_v15  ;;  %v670_v24 = vld [vmem:[%s967_s5 + $0x8] sm:$0xff] }
  0xa3   :  { %v51_v31 = vmax.f32 %v50_v29, 1e-12  ;;  %v30_v33 = vmul.f32 %v713_v27, %v28_v16 }
  0xa4   :  { %714 = vrcp.f32 %v81_v28  ;;  %v62_v34 = vsel %vm61_vm6, %v58_v15, %v60_v30 }
  0xa5   :  { %716 = vrcp.f32 %v51_v31  ;;  %v65_v36 = vsel %vm63_vm7, %v64_v32, %v62_v34  ;;  %v32_v37 = vsel %vm31_vm8, %v28_v16, %v30_v33 }
  0xa6   :  { %v66_v38 = vmax.f32 %v65_v36, 1e-12  ;;  %v35_v39 = vsel %vm33_vm9, %v34_v35, %v32_v37 }
  0xa7   :  { %v36_v40 = vmax.f32 %v35_v39, 1e-12 }
  0xa8   :  { %718 = vrcp.f32 %v66_v38 }
  0xa9   :  { %720 = vrcp.f32 %v36_v40 }
  0xae   :  { %v715_v41 = vpop.eup %714 }
  0xaf   :  { %v717_v42 = vpop.eup %716  ;;  %v83_v43 = vmul.f32 %v715_v41, %v778_v0 }
  0xb0   :  { %v53_v45 = vmul.f32 %v717_v42, %v783_v1 }
  0xb1   :  { %685 = vmatpush3.xpose.msk.msra.mxu0 %vm25_vm0, %v83_v43 }
  0xb2   :  { %v719_v44 = vpop.eup %718  ;;  %694 = vmatprep.subr.mxu0 %v738_v12 }
  0xb3   :  { %v721_v46 = vpop.eup %720  ;;  %v68_v47 = vmul.f32 %v719_v44, %v788_v2 }
  0xb4   :  { %687 = vmatmul.mubr.msk.f32.vlgmr.msra.gmra.mrb[0].mxu0 %vm25_vm0, %v53_v45  ;;  %v38_v48 = vmul.f32 %v721_v46, %v799_v6 }
  0xb5   :  { %690 = vmatpush3.xpose.msk.msra.mxu1 %vm25_vm0, %v68_v47  ;;  %696 = vmatprep.mubr.msk.f32.mxu0 %vm739_vm1, %v738_v12 }
  0xb6   :  { %699 = vmatprep.subr.mxu1 %v738_v12  ;;  %695 = vmatpush3.msra.mxu0 %v830_v49 }
  0xb8   :  { %692 = vmatmul.mubr.msk.f32.vlgmr.msra.gmra.mrb[0].mxu1 %vm25_vm0, %v38_v48 }
  0xb9   :  { %701 = vmatprep.mubr.msk.f32.mxu1 %vm739_vm1, %v738_v12  ;;  %700 = vmatpush3.msra.mxu1 %v830_v49 }
 0x187   :  { %v156_v53 = vpop.f32.mrb[0].mxu0 }
 0x188   :  { %v688_v54 = vpop.f32.mrb[1].mxu0  ;;  %v160_v55 = vmul.f32 0.5, %v156_v53 }
 0x18b   :  { %v233_v56 = vpop.f32.mrb[0].mxu1 }
 0x18c   :  { %v843_v58 = vadd.f32 %v233_v56, %v160_v55  ;;  %v693_v59 = vpop.f32.mrb[1].mxu1 }
 0x18e   :  { %v385_v60 = vsel %vm245_vm11, %v843_v58, -inf  ;;  %v244_v61 = vmul.f32 %v841_v57, %v843_v58  ;;  %v850_v62 = vsel %vm241_vm10, 0.0, %v843_v58 }
 0x18f   :  { %386 = vmax.xlane.f32.xlu0 %v385_v60  ;;  %v397_v63 = vrot.slane %v385_v60, 4  ;;  %v259_v0 = vsel %vm245_vm11, %v850_v62, -inf }
 0x190   :  { %v246_v1 = vsel %vm245_vm11, %v244_v61, 0.0  ;;  %v313_v2 = vrot.slane %v259_v0, 4 }
 0x191   :  { %v398_v3 = vmax.f32 %v385_v60, %v397_v63  ;;  %247 = vadd.xlane.f32.xlu1 %v246_v1  ;;  %v249_v4 = vrot.slane %v246_v1, 4 }
 0x192   :  { %v314_v5 = vmax.f32 %v259_v0, %v313_v2 }
 0x193   :  { %v399_v6 = vrot.slane %v398_v3, 2  ;;  %v250_v7 = vadd.f32 %v249_v4, %v246_v1 }
 0x194   :  { %v315_v8 = vrot.slane %v314_v5, 2 }
 0x195   :  { %v400_v9 = vmax.f32 %v398_v3, %v399_v6  ;;  %v251_v10 = vrot.slane %v250_v7, 2  ;;  %260 = vmax.xlane.f32.xlu1 %v259_v0 }
 0x196   :  { %v316_v11 = vmax.f32 %v314_v5, %v315_v8 }
 0x197   :  { %v401_v13 = vrot.slane %v400_v9, 1  ;;  %v252_v14 = vadd.f32 %v251_v10, %v250_v7 }
 0x198   :  { %v317_v15 = vrot.slane %v316_v11, 1 }
 0x199   :  { %v855_v16 = vmax.f32 %v400_v9, %v401_v13  ;;  %v253_v17 = vrot.slane %v252_v14, 1 }
 0x19a   :  { %v318_v18 = vmax.f32 %v316_v11, %v317_v15 }
 0x19b   :  { %v403_v19 = vsub.f32 %v843_v58, %v855_v16  ;;  %v859_v20 = vadd.f32 %v253_v17, %v252_v14 }
 0x19c   :  { %vm319_vm12 = vcmp.eq.f32.partialorder %v850_v62, %v318_v18 }
 0x19d   :  { %v404_v21 = vmul.f32 1.442695, %v403_v19  ;;  %v320_v22 = vsel %vm319_vm12, %v834_v51, 8  ;;  %v331_v23 = vsub.f32 %v843_v58, %v859_v20  ;;  %v371_v14 = vsub.f32 0.2, %v859_v20 }
 0x19e   :  { %v321_v25 = vsel %vm245_vm11, %v320_v22, 2147483647 }
 0x19f   :  { %722 = vpow2.f32 %v404_v21  ;;  %vm332_vm13 = vcmp.lt.f32.partialorder %v331_v23, 0.0  ;;  %vm333_vm14 = vcmp.gt.f32.partialorder %v331_v23, -0.2  ;;  %v322_v27 = vrot.slane %v321_v25, 4 }
 0x1a0   :  { %vm334_vm15 = vmand %vm332_vm13, %vm333_vm14 }
 0x1a1   :  { %v335_v26 = vsel %vm334_vm15, %v670_v24, -1.0  ;;  %vm323_vm0 = vcmp.lt.s32.totalorder %v321_v25, %v322_v27 }
 0x1a2   :  { %v336_v28 = vsel %vm245_vm11, %v335_v26, -inf  ;;  %v324_v33 = vsel %vm323_vm0, %v321_v25, %v322_v27  ;;  %v255_v27 = vld [vmem:[%s967_s5] sm:$0xff] }
 0x1a3   :  { %v337_v29 = vrot.slane %v336_v28, 4  ;;  %v325_v38 = vrot.slane %v324_v33, 2 }
 0x1a5   :  { %v338_v30 = vmax.f32 %v336_v28, %v337_v29  ;;  %vm326_vm2 = vcmp.lt.s32.totalorder %v324_v33, %v325_v38 }
 0x1a6   :  { %v327_v47 = vsel %vm326_vm2, %v324_v33, %v325_v38 }
 0x1a7   :  { %v339_v31 = vrot.slane %v338_v30, 2  ;;  %v328_v53 = vrot.slane %v327_v47, 1 }
 0x1a9   :  { %v723_v32 = vpop.eup %722  ;;  %v340_v34 = vmax.f32 %v338_v30, %v339_v31  ;;  %vm329_vm5 = vcmp.lt.s32.totalorder %v327_v47, %v328_v53 }
 0x1aa   :  { %v406_v35 = vsel %vm245_vm11, %v723_v32, 0.0  ;;  %v330_v59 = vsel %vm329_vm5, %v327_v47, %v328_v53  ;;  %vm651_vm5 = vcmp.eq.s32.totalorder %v836_v52, 2 }
 0x1ab   :  { %v407_v36 = vrot.slane %v406_v35, 4  ;;  %v341_v37 = vrot.slane %v340_v34, 1 }
 0x1ad   :  { %v408_v39 = vadd.f32 %v407_v36, %v406_v35  ;;  %v342_v40 = vmax.f32 %v340_v34, %v341_v37 }
 0x1af   :  { %v409_v41 = vrot.slane %v408_v39, 2  ;;  %vm343_vm1 = vcmp.eq.f32.partialorder %v335_v26, %v342_v40  ;;  %vm355_vm7 = vcmp.ge.f32.partialorder %v342_v40, 0.0 }
 0x1b0   :  { %v344_v42 = vsel %vm343_vm1, %v834_v51, 8 }
 0x1b1   :  { %v410_v43 = vadd.f32 %v409_v41, %v408_v39  ;;  %v345_v44 = vsel %vm245_vm11, %v344_v42, 2147483647 }
 0x1b2   :  { %v346_v45 = vrot.slane %v345_v44, 4 }
 0x1b3   :  { %v411_v46 = vrot.slane %v410_v43, 1 }
 0x1b4   :  { %vm347_vm3 = vcmp.lt.s32.totalorder %v345_v44, %v346_v45 }
 0x1b5   :  { %v412_v48 = vadd.f32 %v411_v46, %v410_v43  ;;  %v348_v50 = vsel %vm347_vm3, %v345_v44, %v346_v45  ;;  %v461_v45 = vrot.slane %v830_v49, 4 }
 0x1b6   :  { %v349_v54 = vrot.slane %v348_v50, 2 }
 0x1b7   :  { %724 = vrcp.f32 %v412_v48  ;;  %v462_v46 = vadd.f32 %v461_v45, %v830_v49 }
 0x1b8   :  { %vm350_vm4 = vcmp.lt.s32.totalorder %v348_v50, %v349_v54  ;;  %726 = vlog2.f32 %v412_v48 }
 0x1b9   :  { %v351_v55 = vsel %vm350_vm4, %v348_v50, %v349_v54  ;;  %v463_v47 = vrot.slane %v462_v46, 2  ;;  %vm648_vm4 = vcmp.eq.s32.totalorder %v836_v52, 1 }
 0x1ba   :  { %v352_v56 = vrot.slane %v351_v55, 1 }
 0x1bb   :  { %v464_v48 = vadd.f32 %v463_v47, %v462_v46 }
 0x1bc   :  { %vm353_vm6 = vcmp.lt.s32.totalorder %v351_v55, %v352_v56 }
 0x1bd   :  { %v354_v60 = vsel %vm353_vm6, %v351_v55, %v352_v56  ;;  %v465_v53 = vrot.slane %v464_v48, 1  ;;  %vm654_vm6 = vcmp.eq.s32.totalorder %v836_v52, 3 }
 0x1be   :  { %v356_v61 = vsel %vm355_vm7, %v354_v60, %v330_v59  ;;  %vm657_vm7 = vcmp.eq.s32.totalorder %v836_v52, 4 }
 0x1bf   :  { %vm357_vm8 = vcmp.eq.s32.totalorder %v834_v51, %v356_v61  ;;  %v922_v56 = vadd.f32 %v465_v53, %v464_v48 }
 0x1c0   :  { %v672_v63 = vsel %vm357_vm8, 1.0, %v738_v12 }
 0x1c1   :  { %v725_v0 = vpop.eup %724  ;;  %v360_v1 = vmul.f32 %v672_v63, %v843_v58  ;;  %v630_v61 = vmax.f32 %v922_v56, 1.0  ;;  %vm467_vm1 = vcmp.gt.f32.partialorder %v922_v56, 0.0 }
 0x1c2   :  { %v727_v2 = vpop.eup %726  ;;  %v876_v3 = vmul.f32 %v725_v0, %v723_v32 }
 0x1c3   :  { %v414_v4 = vmul.f32 0.6931472, %v727_v2  ;;  %v361_v5 = vsel %vm245_vm11, %v360_v1, 0.0 }
 0x1c4   :  { %697 = vmatmul.mubr.msk.f32.vlgmr.msra.gmra.mrb[2].mxu0 %vm245_vm11, %v876_v3  ;;  %v362_v6 = vrot.slane %v361_v5, 4  ;;  %v436_v55 = vmul.f32 %v841_v57, %v876_v3 }
 0x1c5   :  { %v882_v7 = vadd.f32 %v414_v4, %v855_v16 }
 0x1c6   :  { %v363_v8 = vadd.f32 %v362_v6, %v361_v5  ;;  %v437_v60 = vsel %vm245_vm11, %v436_v55, 0.0 }
 0x1c7   :  { %v424_v51 = vsub.f32 %v882_v7, %v859_v20  ;;  %v438_v0 = vrot.slane %v437_v60, 4 }
 0x1c8   :  { %v364_v9 = vrot.slane %v363_v8, 2 }
 0x1c9   :  { %v439_v4 = vadd.f32 %v438_v0, %v437_v60 }
 0x1ca   :  { %v365_v10 = vadd.f32 %v364_v9, %v363_v8 }
 0x1cc   :  { %v366_v11 = vrot.slane %v365_v10, 1 }
 0x1ce   :  { %v367_v13 = vadd.f32 %v366_v11, %v365_v10  ;;  %v440_v10 = vrot.slane %v439_v4, 2 }
 0x1d0   :  { %v887_v15 = vadd.f32 %v371_v14, %v367_v13  ;;  %v441_v14 = vadd.f32 %v440_v10, %v439_v4 }
 0x1d2   :  { %v373_v45 = vmax.f32 %v887_v15, 0.0 }
 0x21c   :  { %v889_v17 = vpop.xlane.xlu0 %386 }
 0x21d   :  { %v388_v18 = vsub.f32 %v843_v58, %v889_v17 }
 0x21e   :  { %v893_v19 = vpop.xlane.xlu1 %247 }
 0x21f   :  { %v389_v16 = vmul.f32 1.442695, %v388_v18  ;;  %v279_v22 = vsub.f32 %v843_v58, %v893_v19 }
 0x221   :  { %728 = vpow2.f32 %v389_v16  ;;  %vm280_vm10 = vcmp.lt.f32.partialorder %v279_v22, 0.0  ;;  %vm281_vm12 = vcmp.gt.f32.partialorder %v279_v22, -0.2  ;;  %v425_v16 = vsel %vm245_vm11, %v424_v51, 0.0 }
 0x222   :  { %v261_v21 = vpop.xlane.xlu1 %260  ;;  %vm282_vm13 = vmand %vm280_vm10, %vm281_vm12  ;;  %v442_v22 = vrot.slane %v441_v14, 1 }
 0x223   :  { %vm262_vm9 = vcmp.eq.f32.partialorder %v850_v62, %v261_v21  ;;  %v283_v30 = vsel %vm282_vm13, %v255_v27, -1.0 }
 0x224   :  { %v263_v23 = vsel %vm262_vm9, %v836_v52, 8  ;;  %v284_v62 = vsel %vm245_vm11, %v283_v30, -inf }
 0x225   :  { %v264_v24 = vsel %vm245_vm11, %v263_v23, 2147483647  ;;  %v443_v23 = vadd.f32 %v442_v22, %v441_v14 }
 0x226   :  { %v266_v25 = vshra.s32 %v264_v24, 16  ;;  %v265_v33 = vand.u32 65535, %v264_v24 }
 0x227   :  { %v448_v24 = vsel %vm245_vm11, %v443_v23, 0.0 }
 0x228   :  { %v268_v26 = vcvt.s32.f32 %v266_v25  ;;  %v267_v35 = vcvt.s32.f32 %v265_v33 }
 0x22a   :  { %269 = vmin.xlane.f32.xlu1 %v268_v26 }
 0x22b   :  { %v729_v28 = vpop.eup %728 }
 0x22c   :  { %v391_v29 = vsel %vm245_vm11, %v729_v28, 0.0 }
 0x22d   :  { %392 = vadd.xlane.f32.xlu0 %v391_v29 }
 0x231   :  { %285 = vmax.xlane.f32.xlu0 %v284_v62 }
 0x297   :  { %v539_v31 = vpop.f32.mrb[2].mxu0 }
 0x298   :  { %v698_v32 = vpop.f32.mrb[3].mxu0  ;;  %v543_v50 = vmul.f32 %v539_v31, %v830_v49 }
 0x29a   :  { %v544_v54 = vrot.slane %v543_v50, 4 }
 0x29c   :  { %v545_v59 = vadd.f32 %v544_v54, %v543_v50 }
 0x29e   :  { %v546_v63 = vrot.slane %v545_v59, 2 }
 0x2a0   :  { %v547_v2 = vadd.f32 %v546_v63, %v545_v59  ;;  %v368_v63 = vsub.f32 0.2, %v893_v19 }
 0x2a2   :  { %v548_v3 = vrot.slane %v547_v2, 1 }
 0x2a4   :  { %v549_v13 = vadd.f32 %v548_v3, %v547_v2 }
 0x2b7   :  { %v905_v34 = vpop.xlane.xlu1 %269 }
 0x2b8   :  { %vm271_vm14 = vcmp.eq.f32.partialorder %v268_v26, %v905_v34  ;;  %v276_v51 = vcvt.f32.s32 %v905_v34 }
 0x2b9   :  { %v272_v36 = vsel %vm271_vm14, %v267_v35, inf }
 0x2ba   :  { %v908_v37 = vpop.xlane.xlu0 %392  ;;  %273 = vmin.xlane.f32.xlu1 %v272_v36  ;;  %v277_v31 = vshll.u32 %v276_v51, 16 }
 0x2bb   :  { %730 = vrcp.f32 %v908_v37 }
 0x2bc   :  { %732 = vrcp.f32 %v630_v61 }
 0x2bd   :  { %734 = vlog2.f32 %v908_v37 }
 0x2be   :  { %v911_v38 = vpop.xlane.xlu0 %285 }
 0x2bf   :  { %vm287_vm15 = vcmp.eq.f32.partialorder %v283_v30, %v911_v38  ;;  %vm304_vm2 = vcmp.ge.f32.partialorder %v911_v38, 0.0  ;;  %v380_v38 = vsel %vm245_vm11, %v373_v45, 0.0 }
 0x2c0   :  { %v288_v39 = vsel %vm287_vm15, %v836_v52, 8 }
 0x2c1   :  { %v289_v40 = vsel %vm245_vm11, %v288_v39, 2147483647 }
 0x2c2   :  { %v291_v41 = vshra.s32 %v289_v40, 16  ;;  %v290_v1 = vand.u32 65535, %v289_v40 }
 0x2c4   :  { %v293_v42 = vcvt.s32.f32 %v291_v41  ;;  %v292_v6 = vcvt.s32.f32 %v290_v1 }
 0x2c5   :  { %v731_v43 = vpop.eup %730 }
 0x2c6   :  { %294 = vmin.xlane.f32.xlu0 %v293_v42  ;;  %v435_v44 = vmul.f32 %v731_v43, %v729_v28  ;;  %v733_v18 = vpop.eup %732 }
 0x2c7   :  { %v632_v21 = vmul.f32 %v733_v18, %v549_v13 }
 0x2c8   :  { %702 = vmatmul.mubr.msk.f32.vlgmr.msra.gmra.mrb[2].mxu1 %vm245_vm11, %v435_v44  ;;  %v444_v9 = vmul.f32 %v841_v57, %v435_v44  ;;  %v673_v44 = vsel %vm467_vm1, 1.0, %v738_v12 }
 0x2c9   :  { %v633_v57 = vsel %vm467_vm1, %v632_v21, 0.0 }
 0x2ca   :  { %v445_v11 = vsel %vm245_vm11, %v444_v9, 0.0 }
 0x347   :  { %v274_v7 = vpop.xlane.xlu1 %273 }
 0x348   :  { %v275_v30 = vcvt.f32.s32 %v274_v7 }
 0x34a   :  { %v278_v36 = vadd.s32 %v277_v31, %v275_v30 }
 0x353   :  { %v295_v5 = vpop.xlane.xlu0 %294 }
 0x354   :  { %vm296_vm0 = vcmp.eq.f32.partialorder %v293_v42, %v295_v5  ;;  %v301_v28 = vcvt.f32.s32 %v295_v5 }
 0x355   :  { %v297_v8 = vsel %vm296_vm0, %v292_v6, inf }
 0x356   :  { %298 = vmin.xlane.f32.xlu0 %v297_v8  ;;  %v302_v32 = vshll.u32 %v301_v28, 16 }
 0x35a   :  { %446 = vadd.xlane.f32.xlu0 %v445_v11 }
 0x35e   :  { %426 = vadd.xlane.f32.xlu0 %v425_v16 }
 0x362   :  { %638 = vadd.xlane.f32.xlu0 %v633_v57 }
 0x366   :  { %449 = vadd.xlane.f32.xlu0 %v448_v24 }
 0x39b   :  { %v619_v25 = vpop.f32.mrb[2].mxu1 }
 0x39c   :  { %v703_v26 = vpop.f32.mrb[3].mxu1  ;;  %v623_v27 = vmul.f32 %v619_v25, %v830_v49 }
 0x39e   :  { %v624_v20 = vrot.slane %v623_v27, 4 }
 0x3a0   :  { %v625_v29 = vadd.f32 %v624_v20, %v623_v27 }
 0x3a2   :  { %v626_v35 = vrot.slane %v625_v29, 2 }
 0x3a4   :  { %v627_v41 = vadd.f32 %v626_v35, %v625_v29 }
 0x3a6   :  { %v628_v43 = vrot.slane %v627_v41, 1 }
 0x3a8   :  { %v629_v46 = vadd.f32 %v628_v43, %v627_v41 }
 0x3aa   :  { %v634_v47 = vmul.f32 %v733_v18, %v629_v46 }
 0x3ac   :  { %v635_v48 = vsel %vm467_vm1, %v634_v47, 0.0 }
 0x3e3   :  { %v299_v62 = vpop.xlane.xlu0 %298 }
 0x3e4   :  { %v300_v33 = vcvt.f32.s32 %v299_v62 }
 0x3e6   :  { %v303_v39 = vadd.s32 %v302_v32, %v300_v33 }
 0x3e7   :  { %v447_v15 = vpop.xlane.xlu0 %446 }
 0x3e8   :  { %v305_v40 = vsel %vm304_vm2, %v303_v39, %v278_v36  ;;  %v451_v55 = vrot.slane %v447_v15, 4 }
 0x3e9   :  { %vm306_vm3 = vcmp.eq.s32.totalorder %v836_v52, %v305_v40 }
 0x3ea   :  { %v671_v49 = vsel %vm306_vm3, 1.0, %v738_v12  ;;  %v452_v60 = vadd.f32 %v451_v55, %v447_v15 }
 0x3eb   :  { %v309_v34 = vmul.f32 %v671_v49, %v843_v58  ;;  %v735_v58 = vpop.eup %734  ;;  %v427_v4 = vpop.xlane.xlu0 %426 }
 0x3ec   :  { %v395_v50 = vmul.f32 0.6931472, %v735_v58  ;;  %v453_v56 = vrot.slane %v452_v60, 2  ;;  %v428_v18 = vmul.f32 0.125, %v427_v4 }
 0x3ed   :  { %v310_v42 = vsel %vm245_vm11, %v309_v34, 0.0  ;;  %vm646_vm11 = vcmp.eq.s32.totalorder %v836_v52, 0 }
 0x3ee   :  { %311 = vadd.xlane.f32.xlu1 %v310_v42  ;;  %v396_v53 = vadd.f32 %v395_v50, %v889_v17  ;;  %v454_v6 = vadd.f32 %v453_v56, %v452_v60 }
 0x3ef   :  { %v639_v3 = vpop.xlane.xlu0 %638 }
 0x3f0   :  { %v416_v12 = vsub.f32 %v396_v53, %v893_v19  ;;  %v455_v13 = vrot.slane %v454_v6, 1 }
 0x3f2   :  { %636 = vadd.xlane.f32.xlu1 %v673_v44  ;;  %v417_v54 = vrot.slane %v416_v12, 4  ;;  %v456_v22 = vadd.f32 %v455_v13, %v454_v6 }
 0x3f3   :  { %v450_v23 = vpop.xlane.xlu0 %449 }
 0x3f4   :  { %v418_v59 = vadd.f32 %v417_v54, %v416_v12  ;;  %v457_v27 = vadd.f32 %v456_v22, %v450_v23 }
 0x3f6   :  { %381 = vadd.xlane.f32.xlu1 %v380_v38  ;;  %v419_v61 = vrot.slane %v418_v59, 2  ;;  %v458_v30 = vmul.f32 0.5, %v457_v27 }
 0x3f8   :  { %v420_v1 = vadd.f32 %v419_v61, %v418_v59  ;;  %v459_v39 = vmul.f32 0.125, %v458_v30 }
 0x3fa   :  { %640 = vadd.xlane.f32.xlu1 %v635_v48  ;;  %v421_v8 = vrot.slane %v420_v1, 1  ;;  %v658_v34 = vsel %vm657_vm7, %v459_v39, 0.0 }
 0x3fc   :  { %v422_v11 = vadd.f32 %v421_v8, %v420_v1 }
 0x3fe   :  { %v423_v21 = vmul.f32 0.125, %v422_v11 }
 0x400   :  { %v429_v24 = vadd.f32 %v428_v18, %v423_v21 }
 0x402   :  { %v430_v7 = vmul.f32 0.5, %v429_v24 }
 0x404   :  { %v652_v36 = vsel %vm651_vm5, %v430_v7, 0.0 }
 0x47b   :  { %v312_v0 = vpop.xlane.xlu1 %311 }
 0x47c   :  { %v369_v2 = vadd.f32 %v368_v63, %v312_v0 }
 0x47e   :  { %v370_v37 = vmax.f32 %v369_v2, 0.0 }
 0x47f   :  { %v637_v5 = vpop.xlane.xlu1 %636 }
 0x480   :  { %v374_v17 = vrot.slane %v370_v37, 4  ;;  %736 = vrcp.f32 %v637_v5 }
 0x482   :  { %v375_v9 = vadd.f32 %v374_v17, %v370_v37 }
 0x483   :  { %v382_v10 = vpop.xlane.xlu1 %381 }
 0x484   :  { %v376_v14 = vrot.slane %v375_v9, 2 }
 0x486   :  { %v377_v16 = vadd.f32 %v376_v14, %v375_v9 }
 0x487   :  { %v641_v19 = vpop.xlane.xlu1 %640 }
 0x488   :  { %v378_v57 = vrot.slane %v377_v16, 1  ;;  %v642_v26 = vadd.f32 %v641_v19, %v639_v3 }
 0x48a   :  { %v379_v25 = vadd.f32 %v378_v57, %v377_v16  ;;  %v643_v28 = vmul.f32 0.5, %v642_v26  ;;  %v737_v29 = vpop.eup %736 }
 0x48c   :  { %v383_v20 = vadd.f32 %v382_v10, %v379_v25  ;;  %v645_v33 = vmul.f32 %v737_v29, %v643_v28 }
 0x48e   :  { %v384_v51 = vmul.f32 0.125, %v383_v20  ;;  %v655_v41 = vsel %vm654_vm6, %v645_v33, 0.0 }
 0x490   :  { %v431_v62 = vadd.f32 %v430_v7, %v384_v51  ;;  %v649_v32 = vsel %vm648_vm4, %v384_v51, 0.0 }
 0x492   :  { %v647_v31 = vsel %vm646_vm11, %v431_v62, 0.0 }
 0x493   :  { %v650_v35 = vadd.f32 %v649_v32, %v647_v31 }
 0x495   :  { %v653_v40 = vadd.f32 %v652_v36, %v650_v35 }
 0x497   :  { %v656_v49 = vadd.f32 %v655_v41, %v653_v40 }
 0x499   :  { %v659_v42 = vadd.f32 %v658_v34, %v656_v49 }
 0x49b   :  { %660 = vst [vmem:[%s968_s6] sm:$0x1] %v659_v42 }

</bundles_post_ra>
